<compile_context>
chip_gen: v7x
topology: tpu7x:2x2x1
jax: 0.10.0
libtpu: 0.0.40
codegen_flags: <defaults>
</compile_context>

<pallas_src>
import jax
import jax.numpy as jnp
from jax.experimental import pallas as pl
from jax.experimental.pallas import tpu as pltpu

NUM_CLASS = 60
FEAT_DIM = 640
CLS_PAD = 128  # lane-dense padded class dimension


def _round_up(a, m):
    return -(-a // m) * m


def _vmem_capacity_bytes():
    try:
        return int(pltpu.get_tpu_info().vmem_capacity_bytes)
    except Exception:
        return 64 * 1024 * 1024  # conservative (v7x-sized) fallback


def _make_kernel(*, R, TR, TBAT, TS, S, NJ, CLSP):
    """Streaming spatial-sum + fused linear head.

    Refs:
      x_ref:   (TR, TS)        input tile (batch*channel rows, spatial cols)
      sel_ref: (TBAT, TR)      row->batch selection matrix (1.0 where r//C == b)
      w_ref:   (TR, CLSP)      fused head weight (one (C, CLSP) block per batch)
      b_ref:   (1, CLSP)       bias, padded
      out_ref: (1, TBAT, CLSP) partial logits for this (split, row_block)
      acc_ref: (TR, 1)         per-row pooled-sum accumulator (VMEM scratch)
    """

    def kernel(x_ref, sel_ref, w_ref, b_ref, out_ref, acc_ref):
        s_idx = pl.program_id(0)
        i = pl.program_id(1)
        j = pl.program_id(2)

        @pl.when(j == 0)
        def _init():
            acc_ref[...] = jnp.zeros_like(acc_ref)

        # Global element offset of this tile along the flattened spatial axis.
        g0 = (s_idx * NJ + j) * TS
        is_full = (g0 + TS) <= S

        @pl.when(is_full)
        def _accum_full():
            x = x_ref[...].astype(jnp.float32)
            acc_ref[...] += jnp.sum(x, axis=-1, keepdims=True)

        @pl.when(jnp.logical_not(is_full))
        def _accum_masked():
            col = g0 + jax.lax.broadcasted_iota(jnp.int32, (1, TS), 1)
            x = jnp.where(col < S, x_ref[...].astype(jnp.float32), 0.0)
            acc_ref[...] += jnp.sum(x, axis=-1, keepdims=True)

        @pl.when(j == NJ - 1)
        def _finalize():
            pooled = acc_ref[...]                                       # (TR, 1)
            # Zero rows that came from over-read (padded) batches so stray
            # NaN/Inf garbage cannot leak through 0*NaN in the matmul.
            row = i * TR + jax.lax.broadcasted_iota(jnp.int32, (TR, 1), 0)
            pooled = jnp.where(row < R, pooled, 0.0)
            scaled = w_ref[...] * pooled                                 # (TR, CLSP)
            logits = jnp.dot(sel_ref[...], scaled,
                             preferred_element_type=jnp.float32)         # (TBAT, CLSP)
            bias = b_ref[...] * (s_idx == 0).astype(jnp.float32)         # bias once
            logits = logits + bias
            out_ref[...] = logits.reshape(1, TBAT, CLSP).astype(out_ref.dtype)

    return kernel


def net_forward(x_nchw, w_proj, w_cls, b_cls):
    """x_nchw: (B, C, H, W) float -> logits (B, NUM_CLASS) float32."""
    B, C, H, W = x_nchw.shape
    S = H * W
    R = B * C

    # ---- fused head (tiny, wrapper-side): (1/S) * w_proj @ w_cls ----
    w_comb = jnp.dot(w_proj.astype(jnp.float32), w_cls.astype(jnp.float32),
                     precision=jax.lax.Precision.HIGHEST,
                     preferred_element_type=jnp.float32) / float(S)       # (C, 60)
    w_comb_p = jnp.pad(w_comb, ((0, 0), (0, CLS_PAD - NUM_CLASS)))         # (C, 128)
    bias_p = jnp.pad(b_cls.astype(jnp.float32).reshape(1, NUM_CLASS),
                     ((0, 0), (0, CLS_PAD - NUM_CLASS)))                   # (1, 128)

    # ---- row (batch*channel) blocking: dense sublanes even for C < 8 ----
    tbat_cap = 32 if C <= 64 else 8          # batches per row block (bounds sel/w size)
    if B <= tbat_cap:
        TBAT, NR = B, 1                      # one exact row block: no over-read at all
    else:
        TBAT = tbat_cap                      # multiple of 8
        NR = pl.cdiv(B, TBAT)
    TR = TBAT * C

    # Per-block constants for the fused head (tiny).
    w_full = jnp.tile(w_comb_p, (TBAT, 1))                                 # (TR, 128)
    sel = (jnp.arange(TR, dtype=jnp.int32) // C ==
           jnp.arange(TBAT, dtype=jnp.int32)[:, None]).astype(jnp.float32)  # (TBAT, TR)

    # ---- spatial tiling: generation-aware per-buffer byte target ----
    x2d = jnp.asarray(x_nchw).reshape(R, S)          # pure reshape, no HBM copy
    isize = x2d.dtype.itemsize
    vmem_cap = _vmem_capacity_bytes()
    buf_cap = max(vmem_cap // 6, 1 << 20)            # ~10.7 MiB v7x / ~21 MiB v6e/v5e
    ts_fit = max(128, (buf_cap // (TR * isize)) // 128 * 128)
    TS = min(ts_fit, _round_up(S, 128))
    if NR == 1:
        # Ensure >= ~4 spatial tiles so the reduction can be split across both
        # v7x TensorCores and the DMA pipeline has some depth.
        TS = min(TS, max(512, _round_up(pl.cdiv(S, 4), 128)))
    NT = pl.cdiv(S, TS)                              # total spatial tiles

    # Split the reduction across both TensorCores when the row grid is trivial.
    NSPLIT = 2 if (NR < 2 and NT >= 2) else 1
    NJ = pl.cdiv(NT, NSPLIT)
    grid = (NSPLIT, NR, NJ)

    est = (2 * TR * TS * isize                              # x, double buffered
           + 2 * TBAT * CLS_PAD * 4                         # out block, double buffered
           + 2 * (TBAT * TR + TR * CLS_PAD + CLS_PAD) * 4   # sel / w_full / bias
           + TR * 128 * 4                                   # accumulator (lane padded)
           + (4 << 20))                                     # slack
    vmem_limit = int(min(vmem_cap * 0.9, max(est * 5 // 4, 32 << 20)))

    kernel = _make_kernel(R=R, TR=TR, TBAT=TBAT, TS=TS, S=S, NJ=NJ, CLSP=CLS_PAD)

    out = pl.pallas_call(
        kernel,
        out_shape=jax.ShapeDtypeStruct((NSPLIT, NR * TBAT, CLS_PAD), jnp.float32),
        grid_spec=pltpu.PrefetchScalarGridSpec(
            num_scalar_prefetch=0,
            grid=grid,
            in_specs=[
                # Clamp fully-out-of-range spatial tiles (last split, odd tile
                # count) to a valid block; their contribution is masked to zero.
                pl.BlockSpec((TR, TS),
                             lambda s, i, j: (i, jnp.minimum(s * NJ + j, NT - 1))),
                pl.BlockSpec((TBAT, TR), lambda s, i, j: (0, 0)),
                pl.BlockSpec((TR, CLS_PAD), lambda s, i, j: (0, 0)),
                pl.BlockSpec((1, CLS_PAD), lambda s, i, j: (0, 0)),
            ],
            out_specs=pl.BlockSpec((1, TBAT, CLS_PAD), lambda s, i, j: (s, i, 0)),
            scratch_shapes=[pltpu.VMEM((TR, 1), jnp.float32)],
        ),
        compiler_params=pltpu.CompilerParams(
            dimension_semantics=("parallel", "parallel", "arbitrary"),
            vmem_limit_bytes=vmem_limit,
        ),
    )(x2d, sel, w_full, bias_p)

    logits = jnp.sum(out, axis=0)        # combine split partials (bias added once)
    return logits[:B, :NUM_CLASS]


def init_params(key, in_channels):
    k_proj, k_cls = jax.random.split(key)
    # backbone-stub projection (deterministic, synthetic)
    w_proj = jax.random.normal(k_proj, (in_channels, FEAT_DIM), jnp.float32) * 0.02
    # matches the module's head init: normal_(weight, 0, 0.001), constant_(bias, 0)
    w_cls = jax.random.normal(k_cls, (FEAT_DIM, NUM_CLASS), jnp.float32) * 0.001
    b_cls = jnp.zeros((NUM_CLASS,), jnp.float32)
    return w_proj, w_cls, b_cls


if __name__ == "__main__":
    key = jax.random.PRNGKey(0)
    k_x, k_p = jax.random.split(key)

    B, C, H, W = 2, 4, 16, 16
    x = jax.random.normal(k_x, (B, C, H, W), jnp.float32)
    w_proj, w_cls, b_cls = init_params(k_p, C)

    out = net_forward(x, w_proj, w_cls, b_cls)
    out = jax.block_until_ready(out)
    assert out.shape == (B, NUM_CLASS) and out.dtype == jnp.float32

    # Unfused pure-JAX reference (GAP -> proj -> linear head; dropout is identity).
    feats = jnp.mean(x.astype(jnp.float32).reshape(B, C, H * W), axis=-1) @ w_proj
    ref = feats @ w_cls + b_cls
    assert jnp.allclose(out, ref, atol=1e-5, rtol=1e-3), "mismatch vs reference"

    print("KERNEL_OK")
</pallas_src>

<mosaic_0001>
module attributes {stable_mosaic.version = 11 : i64} {
  func.func @kernel(%arg0: i32, %arg1: i32, %arg2: i32, %arg3: memref<8x256xf32, #tpu.memory_space<vmem>>, %arg4: memref<2x8xf32, #tpu.memory_space<vmem>>, %arg5: memref<8x128xf32, #tpu.memory_space<vmem>>, %arg6: memref<1x128xf32, #tpu.memory_space<vmem>>, %arg7: memref<1x2x128xf32, #tpu.memory_space<vmem>>, %arg8: memref<8x1xf32, #tpu.memory_space<vmem>>) attributes {dimension_semantics = [#tpu.dimension_semantics<parallel>, #tpu.dimension_semantics<parallel>, #tpu.dimension_semantics<arbitrary>], iteration_bounds = array<i64: 1, 1, 1>, scalar_prefetch = 0 : i64, scratch_operands = 1 : i64, tpu.core_type = #tpu.core_type<tc>, window_params = [{transform_indices = @transform_0, window_bounds = array<i64: 8, 256>}, {pipeline_mode = #tpu.pipeline_mode<synchronous>, transform_indices = @transform_1, window_bounds = array<i64: 2, 8>}, {pipeline_mode = #tpu.pipeline_mode<synchronous>, transform_indices = @transform_2, window_bounds = array<i64: 8, 128>}, {pipeline_mode = #tpu.pipeline_mode<synchronous>, transform_indices = @transform_3, window_bounds = array<i64: 1, 128>}, {transform_indices = @transform_4, window_bounds = array<i64: 1, 2, 128>}]} {
    %c0_i32 = arith.constant 0 : i32
    %0 = arith.cmpi eq, %arg2, %c0_i32 : i32
    %1 = arith.extui %0 : i1 to i32
    %c0_i32_0 = arith.constant 0 : i32
    %2 = arith.cmpi ne, %1, %c0_i32_0 : i32
    scf.if %2 {
      %cst = arith.constant 0.000000e+00 : f32
      %16 = vector.broadcast %cst : f32 to vector<8x1xf32>
      %c0 = arith.constant 0 : index
      %c0_7 = arith.constant 0 : index
      %17 = vector.load %arg8[%c0, %c0_7] : memref<8x1xf32, #tpu.memory_space<vmem>>, vector<8x1xf32>
      tpu.vector_store %arg8[%c0, %c0_7], %16 {strides = array<i32>} : memref<8x1xf32, #tpu.memory_space<vmem>>, vector<8x1xf32>,
    } else {
    }
    %c1_i32 = arith.constant 1 : i32
    %3 = arith.muli %arg0, %c1_i32 : i32
    %4 = arith.addi %3, %arg2 : i32
    %c256_i32 = arith.constant 256 : i32
    %5 = arith.muli %4, %c256_i32 : i32
    %c256_i32_1 = arith.constant 256 : i32
    %6 = arith.addi %5, %c256_i32_1 : i32
    %c256_i32_2 = arith.constant 256 : i32
    %7 = arith.cmpi sle, %6, %c256_i32_2 : i32
    %8 = arith.extui %7 : i1 to i32
    %c0_i32_3 = arith.constant 0 : i32
    %9 = arith.cmpi ne, %8, %c0_i32_3 : i32
    scf.if %9 {
      %c0 = arith.constant 0 : index
      %c0_7 = arith.constant 0 : index
      %16 = vector.load %arg3[%c0, %c0_7] : memref<8x256xf32, #tpu.memory_space<vmem>>, vector<8x256xf32>
      %c0_8 = arith.constant 0 : index
      %c0_9 = arith.constant 0 : index
      %17 = vector.load %arg8[%c0_8, %c0_9] : memref<8x1xf32, #tpu.memory_space<vmem>>, vector<8x1xf32>
      %cst = arith.constant dense<0.000000e+00> : vector<8xf32>
      %18 = vector.multi_reduction <add>, %16, %cst [1] : vector<8x256xf32> to vector<8xf32>
      %19 = vector.shape_cast %18 : vector<8xf32> to vector<8x1xf32>
      %20 = arith.addf %17, %19 : vector<8x1xf32>
      %c0_10 = arith.constant 0 : index
      %c0_11 = arith.constant 0 : index
      %21 = vector.load %arg8[%c0_10, %c0_11] : memref<8x1xf32, #tpu.memory_space<vmem>>, vector<8x1xf32>
      tpu.vector_store %arg8[%c0_10, %c0_11], %20 {strides = array<i32>} : memref<8x1xf32, #tpu.memory_space<vmem>>, vector<8x1xf32>,
    } else {
    }
    %true = arith.constant true
    %10 = arith.xori %7, %true : i1
    %11 = arith.extui %10 : i1 to i32
    %c0_i32_4 = arith.constant 0 : i32
    %12 = arith.cmpi ne, %11, %c0_i32_4 : i32
    scf.if %12 {
      %16 = tpu.iota {dimensions = array<i32: 1>} : vector<1x256xi32>
      %17 = vector.broadcast %5 : i32 to vector<1x256xi32>
      %18 = arith.addi %17, %16 : vector<1x256xi32>
      %c256_i32_7 = arith.constant 256 : i32
      %19 = vector.broadcast %c256_i32_7 : i32 to vector<1x256xi32>
      %20 = arith.cmpi slt, %18, %19 : vector<1x256xi32>
      %c0 = arith.constant 0 : index
      %c0_8 = arith.constant 0 : index
      %21 = vector.load %arg3[%c0, %c0_8] : memref<8x256xf32, #tpu.memory_space<vmem>>, vector<8x256xf32>
      %cst = arith.constant 0.000000e+00 : f32
      %22 = vector.shape_cast %20 : vector<1x256xi1> to vector<1x256xi1>
      %23 = vector.broadcast %22 : vector<1x256xi1> to vector<8x256xi1>
      %24 = vector.broadcast %cst : f32 to vector<8x256xf32>
      %25 = arith.select %23, %21, %24 : vector<8x256xi1>, vector<8x256xf32>
      %c0_9 = arith.constant 0 : index
      %c0_10 = arith.constant 0 : index
      %26 = vector.load %arg8[%c0_9, %c0_10] : memref<8x1xf32, #tpu.memory_space<vmem>>, vector<8x1xf32>
      %cst_11 = arith.constant dense<0.000000e+00> : vector<8xf32>
      %27 = vector.multi_reduction <add>, %25, %cst_11 [1] : vector<8x256xf32> to vector<8xf32>
      %28 = vector.shape_cast %27 : vector<8xf32> to vector<8x1xf32>
      %29 = arith.addf %26, %28 : vector<8x1xf32>
      %c0_12 = arith.constant 0 : index
      %c0_13 = arith.constant 0 : index
      %30 = vector.load %arg8[%c0_12, %c0_13] : memref<8x1xf32, #tpu.memory_space<vmem>>, vector<8x1xf32>
      tpu.vector_store %arg8[%c0_12, %c0_13], %29 {strides = array<i32>} : memref<8x1xf32, #tpu.memory_space<vmem>>, vector<8x1xf32>,
    } else {
    }
    %c0_i32_5 = arith.constant 0 : i32
    %13 = arith.cmpi eq, %arg2, %c0_i32_5 : i32
    %14 = arith.extui %13 : i1 to i32
    %c0_i32_6 = arith.constant 0 : i32
    %15 = arith.cmpi ne, %14, %c0_i32_6 : i32
    scf.if %15 {
      %c0 = arith.constant 0 : index
      %c0_7 = arith.constant 0 : index
      %16 = vector.load %arg8[%c0, %c0_7] : memref<8x1xf32, #tpu.memory_space<vmem>>, vector<8x1xf32>
      %c8_i32 = arith.constant 8 : i32
      %17 = arith.muli %arg1, %c8_i32 : i32
      %18 = tpu.iota {dimensions = array<i32: 0>} : vector<8x1xi32>
      %19 = vector.broadcast %17 : i32 to vector<8x1xi32>
      %20 = arith.addi %19, %18 : vector<8x1xi32>
      %c8_i32_8 = arith.constant 8 : i32
      %21 = vector.broadcast %c8_i32_8 : i32 to vector<8x1xi32>
      %22 = arith.cmpi slt, %20, %21 : vector<8x1xi32>
      %cst = arith.constant 0.000000e+00 : f32
      %23 = vector.broadcast %cst : f32 to vector<8x1xf32>
      %24 = arith.select %22, %16, %23 : vector<8x1xi1>, vector<8x1xf32>
      %c0_9 = arith.constant 0 : index
      %c0_10 = arith.constant 0 : index
      %25 = vector.load %arg5[%c0_9, %c0_10] : memref<8x128xf32, #tpu.memory_space<vmem>>, vector<8x128xf32>
      %26 = vector.broadcast %24 : vector<8x1xf32> to vector<8x128xf32>
      %27 = arith.mulf %25, %26 : vector<8x128xf32>
      %c0_11 = arith.constant 0 : index
      %c0_12 = arith.constant 0 : index
      %28 = vector.load %arg4[%c0_11, %c0_12] : memref<2x8xf32, #tpu.memory_space<vmem>>, vector<2x8xf32>
      %cst_13 = arith.constant dense<0.000000e+00> : vector<2x128xf32>
      %29 = tpu.matmul %28, %27, %cst_13 {dimension_numbers = #tpu.dot_dimension_numbers<[1], [0], [0], [1], [0, 0, 1, 1], [], []>} : vector<2x8xf32>, vector<8x128xf32>, vector<2x128xf32> -> vector<2x128xf32>
      %c0_14 = arith.constant 0 : index
      %c0_15 = arith.constant 0 : index
      %30 = vector.load %arg6[%c0_14, %c0_15] : memref<1x128xf32, #tpu.memory_space<vmem>>, vector<1x128xf32>
      %c0_i32_16 = arith.constant 0 : i32
      %31 = arith.cmpi eq, %arg0, %c0_i32_16 : i32
      %32 = arith.extui %31 : i1 to i32
      %33 = arith.sitofp %32 : i32 to f32
      %34 = vector.broadcast %33 : f32 to vector<1x128xf32>
      %35 = arith.mulf %30, %34 : vector<1x128xf32>
      %36 = vector.broadcast %35 : vector<1x128xf32> to vector<2x128xf32>
      %37 = arith.addf %29, %36 : vector<2x128xf32>
      %38 = vector.shape_cast %37 : vector<2x128xf32> to vector<1x2x128xf32>
      %c0_17 = arith.constant 0 : index
      %c0_18 = arith.constant 0 : index
      %c0_19 = arith.constant 0 : index
      %39 = vector.load %arg7[%c0_17, %c0_18, %c0_19] : memref<1x2x128xf32, #tpu.memory_space<vmem>>, vector<1x2x128xf32>
      tpu.vector_store %arg7[%c0_17, %c0_18, %c0_19], %38 {strides = array<i32>} : memref<1x2x128xf32, #tpu.memory_space<vmem>>, vector<1x2x128xf32>,
    } else {
    }
    return
  }
  func.func @transform_0(%arg0: i32, %arg1: i32, %arg2: i32) -> (i32, i32) {
    %c1_i32 = arith.constant 1 : i32
    %0 = arith.muli %arg0, %c1_i32 : i32
    %1 = arith.addi %0, %arg2 : i32
    %c0_i32 = arith.constant 0 : i32
    %2 = arith.minsi %1, %c0_i32 : i32
    %c0_i32_0 = arith.constant 0 : i32
    return %arg1, %2 : i32, i32
  }
  func.func @transform_1(%arg0: i32, %arg1: i32, %arg2: i32) -> (i32, i32) {
    %c0_i32 = arith.constant 0 : i32
    %c0_i32_0 = arith.constant 0 : i32
    %c0_i32_1 = arith.constant 0 : i32
    return %c0_i32, %c0_i32_0 : i32, i32
  }
  func.func @transform_2(%arg0: i32, %arg1: i32, %arg2: i32) -> (i32, i32) {
    %c0_i32 = arith.constant 0 : i32
    %c0_i32_0 = arith.constant 0 : i32
    %c0_i32_1 = arith.constant 0 : i32
    return %c0_i32, %c0_i32_0 : i32, i32
  }
  func.func @transform_3(%arg0: i32, %arg1: i32, %arg2: i32) -> (i32, i32) {
    %c0_i32 = arith.constant 0 : i32
    %c0_i32_0 = arith.constant 0 : i32
    %c0_i32_1 = arith.constant 0 : i32
    return %c0_i32, %c0_i32_0 : i32, i32
  }
  func.func @transform_4(%arg0: i32, %arg1: i32, %arg2: i32) -> (i32, i32, i32) {
    %c0_i32 = arith.constant 0 : i32
    %c0_i32_0 = arith.constant 0 : i32
    return %arg0, %arg1, %c0_i32 : i32, i32, i32
  }
}

</mosaic_0001>

<bundles_post_ra>
// kernel: tpu_custom_call.1
= control target key start
LH: loop header
LB: loop body
LE: loop exit
PB: predicated region body
PF: predicated region fallthrough
CT: control target
= control target key end

     0   :  { %9 = vsyncpa [#allocation4], 0  ;;  %s386_s0 = inlined_call_operand.hbm [shape: f32[8,256], index: 0, kind: input, shape index: {}]   ;;  %s387_s1 = inlined_call_operand.vmem [shape: f32[2,8], index: 1, kind: input, shape index: {}]   ;;  %s388_s2 = inlined_call_operand.hbm [shape: f32[8,128], index: 2, kind: input, shape index: {}]   ;;  %s389_s3 = inlined_call_operand.vmem [shape: f32[1,128], index: 3, kind: input, shape index: {}]   ;;  %s390_s4 = inlined_call_operand.hbm [shape: f32[1,2,128], index: 4, kind: output, shape index: {}]  }
   0x1   :  { %10 = vsyncpa [#allocation7], 0 }
   0x2   :  { %11 = vsyncpa [#allocation5], 0  ;;  %s313_s15 = smov [#allocation3]   ;;  %s314_s17 = smov [#allocation6]  }
   0x3   :  { %s24_s16 = sshll.u32 %s313_s15, 4  ;;  %s36_s18 = sshll.u32 %s314_s17, 4  ;;  %s25_s16 = int_to_ptr.vmem [resolvable:$true] %s24_s16  ;;  %s37_s18 = int_to_ptr.vmem [resolvable:$true] %s36_s18 }
   0x4   :  { %s241_s21 = scalar_lea.hbm %s386_s0, 256 }
   0x5   :  { %p242_p0 = scmp.ne.s32.totalorder %s386_s0, %s241_s21  ;;  %p245_p1 = scmp.lt.u32.totalorder %s241_s21, %s386_s0 }
   0x7   :  { %p247_p2 = pnand %p245_p1, %p242_p0 }
   0x9   :  { %250 = shalt.err (!%p247_p2)
}
   0xa   :  { %s251_s26 = scalar_lea.vmem %s25_s16, 256  ;;  %p256_p4 = scmp.lt.s32.totalorder %s25_s16, %s25_s16 }
   0xb   :  { %p252_p3 = scmp.ne.s32.totalorder %s25_s16, %s251_s26  ;;  %p257_p5 = scmp.lt.s32.totalorder %s251_s26, %s251_s26 }
   0xd   :  { %p258_p6 = por %p257_p5, %p256_p4 }
   0xf   :  { %p259_p7 = pnand %p258_p6, %p252_p3 }
  0x11   :  { %262 = shalt.err (!%p259_p7)
}
  0x12   :  { %27 = dma.hbm_to_vmem [thread:$0]  %s386_s0, 256, %s25_s16, [#allocation4]  }
  0x13   :  { %s263_s5 = scalar_lea.hbm %s388_s2, 128 }
  0x14   :  { %p264_p8 = scmp.ne.s32.totalorder %s388_s2, %s263_s5  ;;  %p267_p9 = scmp.lt.u32.totalorder %s263_s5, %s388_s2 }
  0x16   :  { %p269_p10 = pnand %p267_p9, %p264_p8 }
  0x18   :  { %272 = shalt.err (!%p269_p10)
}
  0x19   :  { %s273_s10 = scalar_lea.vmem %s37_s18, 128  ;;  %p278_p12 = scmp.lt.s32.totalorder %s37_s18, %s37_s18 }
  0x1a   :  { %p274_p11 = scmp.ne.s32.totalorder %s37_s18, %s273_s10  ;;  %p279_p13 = scmp.lt.s32.totalorder %s273_s10, %s273_s10 }
  0x1c   :  { %p280_p0 = por %p279_p13, %p278_p12 }
  0x1e   :  { %p281_p1 = pnand %p280_p0, %p274_p11 }
  0x20   :  { %284 = shalt.err (!%p281_p1)
}
  0x21   :  { %39 = dma.hbm_to_vmem [thread:$0]  %s388_s2, 128, %s37_s18, [#allocation7]  }
  0x22   :  { %307 = dma.done.wait [#allocation4], 256  }
  0x23   :  { %308 = vsyncadd [#allocation4], 4294967040 }
  0x24   :  { %309 = dma.done.wait [#allocation7], 128  }
  0x25   :  { %310 = vsyncadd [#allocation7], 4294967168  ;;  %vm56_vm0 = vcmask 7168   ;;  %v315_v0 = vmov 0.0   ;;  %v65_v1 = vld [vmem:[#allocation3] sm:$0xff]  ;;  %v66_v2 = vld [vmem:[#allocation3 + $0x8] sm:$0xff] }
  0x26   :  { %57 = vst.msk [vmem:[#allocation2] sm:$0xff] %vm56_vm0, %v315_v0  ;;  %229 = vmatprep.subr.mxu0 %v315_v0  ;;  %v68_v3 = vadd.f32 %v66_v2, %v65_v1  ;;  %v316_v4 = vmov 0   ;;  %vm317_vm1 = vmmov 0   ;;  %v112_v9 = vld [vmem:[#allocation6] sm:$0xff]  ;;  %v119_v12 = vld [vmem:[%s387_s1] sm:$0x3] }
  0x27   :  { %240 = vset.pattern.permute.xlu0 %v316_v4  ;;  %231 = vmatprep.mubr.msk.f32.mxu0 %vm317_vm1, %v315_v0  ;;  %vm132_vm2 = vcmask 64512   ;;  %v225_v13 = vld [vmem:[%s389_s3] ss:$0 sm:$0xff]  ;;  %s318_s15 = smov [#allocation8]  }
  0x28   :  { %69 = vadd.xlane.f32.xlu0 %v68_v3  ;;  %s213_s16 = sshll.u32 %s318_s15, 4  ;;  %s214_s16 = int_to_ptr.vmem [resolvable:$true] %s213_s16 }
  0x29   :  { %s285_s17 = scalar_lea.vmem %s214_s16, 32  ;;  %p290_p3 = scmp.lt.s32.totalorder %s214_s16, %s214_s16 }
  0x2a   :  { %p286_p2 = scmp.ne.s32.totalorder %s214_s16, %s285_s17  ;;  %p291_p4 = scmp.lt.s32.totalorder %s285_s17, %s285_s17 }
  0x2c   :  { %p292_p5 = por %p291_p4, %p290_p3 }
  0x2d   :  { %v67_v5 = vld [vmem:[#allocation2] sm:$0xff] }
  0x2e   :  { %p293_p6 = pnand %p292_p5, %p286_p2 }
  0xb5   :  { %v70_v6 = vpop.xlane.xlu0 %69 }
  0xb6   :  { %v71_v7 = vadd.f32 %v70_v6, %v67_v5 }
  0xb8   :  { %73 = vst.msk [vmem:[#allocation2] sm:$0xff] %vm56_vm0, %v71_v7 }
  0xbf   :  { %v104_v8 = vld [vmem:[#allocation2] sm:$0xff] }
  0xc0   :  { %115 = vperm.xlu0 %240, %v104_v8  }
 0x13f   :  { %v116_v10 = vpop.permute.xlu0 %115 }
 0x140   :  { %v118_v11 = vmul.f32 %v116_v10, %v112_v9 }
 0x142   :  { %230 = vmatpush3.msra.mxu0 %v118_v11 }
 0x143   :  { %232 = vmatmul.mubr.msk.f32.vlgmr.msra.gmra.mrb[0].mxu0 %vm132_vm2, %v119_v12 }
 0x216   :  { %v202_v14 = vpop.f32.mrb[0].mxu0 }
 0x217   :  { %v203_v15 = vadd.f32 %v225_v13, %v202_v14  ;;  %v233_v16 = vpop.f32.mrb[1].mxu0 }
 0x219   :  { %206 = vst [vmem:[#allocation8] sm:$0x3] %v203_v15 }
 0x21a   :  { %296 = shalt.err (!%p293_p6)
}
 0x21b   :  { %s297_s19 = scalar_lea.hbm %s390_s4, 32 }
 0x21c   :  { %p298_p7 = scmp.ne.s32.totalorder %s390_s4, %s297_s19  ;;  %p301_p8 = scmp.lt.u32.totalorder %s297_s19, %s390_s4 }
 0x21e   :  { %p303_p9 = pnand %p301_p8, %p298_p7 }
 0x220   :  { %306 = shalt.err (!%p303_p9)
}
 0x221   :  { %216 = dma.vmem_to_hbm [thread:$0]  %s214_s16, 32, %s390_s4, [#allocation5]  }
 0x222   :  { %311 = dma.done.wait [#allocation5], 32  }
 0x223   :  { %312 = vsyncadd [#allocation5], 4294967264 }
 0x224   :  { %220 = vsyncpa [#allocation4], 1 }
 0x225   :  { %221 = vsyncpa [#allocation7], 1 }
 0x226   :  { %222 = vsyncpa [#allocation5], 1 }

</bundles_post_ra>
